<compile_context>
chip_gen: v7x
topology: tpu7x:2x2x1
jax: 0.10.0
libtpu: 0.0.40
codegen_flags: <defaults>
</compile_context>

<pallas_src>
import jax
import jax.numpy as jnp
from jax.experimental import pallas as pl
from jax.experimental.pallas import tpu as pltpu

C = 32            # channel count fixed by the module (Conv2d(32, 32, 1))
TILE_HW = 8192    # max spatial positions per tile (1 MiB/tensor/tile in f32)


def _round_up(x, m):
    return ((x + m - 1) // m) * m


def _choose_hw_tile(hw, n, cap=TILE_HW, min_steps=4):
    """Pick the spatial tile (lane dim, multiple of 128).

    Prefers tiles that (a) keep at least `min_steps` grid steps (megacore /
    2-core v7x), hard floor of 2 steps when possible, and (b) minimize
    traffic + per-step overhead (~0.35us/step ~= ~1200 positions of HBM time).
    Divisor tiles add zero padding; `cap` is allowed for very large images.
    """
    hw128 = _round_up(hw, 128)
    cands = {t for t in range(128, min(cap, hw128) + 1, 128) if hw128 % t == 0}
    if hw128 > cap:
        cands.add(cap)

    def padded(t):
        return _round_up(hw128, t)

    def steps(t):
        return n * (padded(t) // t)

    def cost(t):  # in "spatial positions": real traffic + per-step overhead
        return n * padded(t) + steps(t) * 1200

    pool = ([t for t in cands if steps(t) >= min_steps]
            or [t for t in cands if steps(t) >= 2]
            or list(cands))
    return min(pool, key=cost)


def sft_kernel(x0_ref, x1_ref, w1_ref, b1_ref, ws1_ref, bs1_ref,
               wt1_ref, bt1_ref, o_ref):
    """One (C, T) spatial tile, fully fused.

    x0_ref, x1_ref : (32, T)   f32, NCHW-native (channels on sublanes, HW on lanes)
    w1_ref         : (64, 32)  [scale_conv0 ; shift_conv0] weights (f32 or bf16)
    b1_ref         : (64, 1)   f32
    ws1_ref,wt1_ref: (32, 32)  second-layer weights per branch (no zero blocks)
    bs1_ref        : (32, 1)   scale bias with the "+1" already folded in
    bt1_ref        : (32, 1)
    o_ref          : (32, T)
    """
    cdt = w1_ref.dtype
    x1 = x1_ref[...].astype(cdt)                                   # (32, T)
    # Fused first layer of both branches: (64,32) @ (32,T), f32 accumulate.
    h = jnp.dot(w1_ref[...], x1, preferred_element_type=jnp.float32) + b1_ref[...]
    h = jnp.maximum(h, 0.1 * h)                                    # leaky_relu(0.1)
    h = h.astype(cdt)
    # Second layer, split per branch (drops the block-diagonal zero blocks).
    scale_p1 = jnp.dot(ws1_ref[...], h[:C, :],
                       preferred_element_type=jnp.float32) + bs1_ref[...]
    shift = jnp.dot(wt1_ref[...], h[C:, :],
                    preferred_element_type=jnp.float32) + bt1_ref[...]
    o_ref[...] = (x0_ref[...] * scale_p1 + shift).astype(o_ref.dtype)


def pack_params(p, use_bf16_matmul=False):
    """Weights are kept in PyTorch (Cout, Cin) orientation; biases are (Cout,)."""
    wdt = jnp.bfloat16 if use_bf16_matmul else jnp.float32
    w1 = jnp.concatenate([p["ws0"], p["wt0"]], axis=0).astype(wdt)      # (64, 32)
    b1 = jnp.concatenate([p["bs0"], p["bt0"]], axis=0)[:, None]         # (64, 1) f32
    ws1 = p["ws1"].astype(wdt)                                          # (32, 32)
    wt1 = p["wt1"].astype(wdt)
    bs1 = (p["bs1"] + 1.0)[:, None]   # fold the "+1" of (scale + 1)    # (32, 1)
    bt1 = p["bt1"][:, None]                                             # (32, 1)
    return w1, b1, ws1, bs1, wt1, bt1


def sft_layer(x0_nchw, x1_nchw, params, *, use_bf16_matmul=False,
              tile_hw_cap=TILE_HW):
    """params dict: ws0, bs0, ws1, bs1, wt0, bt0, wt1, bt1 with
       w* shaped (Cout, Cin) (PyTorch weight[:, :, 0, 0]) and b* shaped (Cout,)."""
    N, Cc, H, W = x0_nchw.shape
    assert Cc == C
    HW = H * W

    # NCHW -> (N, C, HW): free, contiguous reshape (no transpose, no copy).
    x0 = x0_nchw.reshape(N, C, HW)
    x1 = x1_nchw.reshape(N, C, HW)

    T = _choose_hw_tile(HW, N, cap=tile_hw_cap)
    HW_pad = _round_up(HW, T)
    if HW_pad != HW:   # only pad the last (lane) axis; no full-tensor transpose
        pad = HW_pad - HW
        x0 = jnp.pad(x0, ((0, 0), (0, 0), (0, pad)))
        x1 = jnp.pad(x1, ((0, 0), (0, 0), (0, pad)))

    w1, b1, ws1, bs1, wt1, bt1 = pack_params(params, use_bf16_matmul)

    x_spec = pl.BlockSpec((None, C, T), lambda n, t: (n, 0, t))
    # Weights/biases are tiny (<40 KiB total) and grid-invariant; constant
    # index_map means they are fetched once and kept resident.
    w1_spec = pl.BlockSpec((2 * C, C), lambda n, t: (0, 0))
    w2_spec = pl.BlockSpec((C, C), lambda n, t: (0, 0))
    b1_spec = pl.BlockSpec((2 * C, 1), lambda n, t: (0, 0))
    b2_spec = pl.BlockSpec((C, 1), lambda n, t: (0, 0))

    out = pl.pallas_call(
        sft_kernel,
        out_shape=jax.ShapeDtypeStruct((N, C, HW_pad), x0_nchw.dtype),
        grid_spec=pltpu.PrefetchScalarGridSpec(
            num_scalar_prefetch=0,
            grid=(N, HW_pad // T),
            in_specs=[x_spec, x_spec,
                      w1_spec, b1_spec, w2_spec, b2_spec, w2_spec, b2_spec],
            out_specs=x_spec,
        ),
        compiler_params=pltpu.CompilerParams(
            dimension_semantics=("parallel", "parallel"),
            vmem_limit_bytes=32 * 1024 * 1024,  # headroom on v5e's 16 MiB default
        ),
    )(x0, x1, w1, b1, ws1, bs1, wt1, bt1)

    if HW_pad != HW:
        out = out[:, :, :HW]
    return out.reshape(N, C, H, W)


def make_params(key):
    """Deterministic synthetic weights matching nn.Conv2d(32, 32, 1) shapes:
    weight (Cout, Cin) (= PyTorch weight[:, :, 0, 0]), bias (Cout,)."""
    ks = jax.random.split(key, 8)
    bound = 1.0 / jnp.sqrt(C)

    def w(k):
        return jax.random.uniform(k, (C, C), jnp.float32, -bound, bound)

    def b(k):
        return jax.random.uniform(k, (C,), jnp.float32, -bound, bound)

    return dict(ws0=w(ks[0]), bs0=b(ks[1]), ws1=w(ks[2]), bs1=b(ks[3]),
                wt0=w(ks[4]), bt0=b(ks[5]), wt1=w(ks[6]), bt1=b(ks[7]))


def sft_layer_ref(x0, x1, p):
    """Pure-JAX reference (same math, NCHW)."""
    def conv1x1(x, w, b):  # w: (Cout, Cin), b: (Cout,)
        return jnp.einsum("oc,nchw->nohw", w, x) + b[None, :, None, None]

    h = conv1x1(x1, p["ws0"], p["bs0"])
    h = jnp.where(h > 0, h, 0.1 * h)
    scale = conv1x1(h, p["ws1"], p["bs1"])
    g = conv1x1(x1, p["wt0"], p["bt0"])
    g = jnp.where(g > 0, g, 0.1 * g)
    shift = conv1x1(g, p["wt1"], p["bt1"])
    return x0 * (scale + 1.0) + shift


if __name__ == "__main__":
    key = jax.random.PRNGKey(0)
    k0, k1, kp, k2, k3 = jax.random.split(key, 5)
    params = make_params(kp)

    # Case 1: aligned spatial size (HW = 256, multiple of 128 -> zero-copy path).
    N, H, W = 2, 16, 16
    x0 = jax.random.normal(k0, (N, C, H, W), jnp.float32)   # features
    x1 = jax.random.normal(k1, (N, C, H, W), jnp.float32)   # conditions
    out = jax.block_until_ready(sft_layer(x0, x1, params))
    ref = sft_layer_ref(x0, x1, params)
    assert out.shape == (N, C, H, W)
    assert jnp.allclose(out, ref, atol=1e-4, rtol=1e-4)

    # Case 2: ragged spatial size (HW = 143 -> padded to 256 on the lane axis).
    N2, H2, W2 = 1, 13, 11
    y0 = jax.random.normal(k2, (N2, C, H2, W2), jnp.float32)
    y1 = jax.random.normal(k3, (N2, C, H2, W2), jnp.float32)
    out2 = jax.block_until_ready(sft_layer(y0, y1, params))
    ref2 = sft_layer_ref(y0, y1, params)
    assert out2.shape == (N2, C, H2, W2)
    assert jnp.allclose(out2, ref2, atol=1e-4, rtol=1e-4)

    # Case 3: opt-in bf16 MXU path (f32 accumulation; relaxed numerics by design).
    out3 = jax.block_until_ready(sft_layer(x0, x1, params, use_bf16_matmul=True))
    assert jnp.allclose(out3, ref, atol=2e-1, rtol=2e-2)

    print("KERNEL_OK")
</pallas_src>

<mosaic_0001>
module attributes {stable_mosaic.version = 11 : i64} {
  func.func @sft_kernel(%arg0: i32, %arg1: i32, %arg2: memref<1x32x128xf32, #tpu.memory_space<vmem>>, %arg3: memref<1x32x128xf32, #tpu.memory_space<vmem>>, %arg4: memref<64x32xf32, #tpu.memory_space<vmem>>, %arg5: memref<64x1xf32, #tpu.memory_space<vmem>>, %arg6: memref<32x32xf32, #tpu.memory_space<vmem>>, %arg7: memref<32x1xf32, #tpu.memory_space<vmem>>, %arg8: memref<32x32xf32, #tpu.memory_space<vmem>>, %arg9: memref<32x1xf32, #tpu.memory_space<vmem>>, %arg10: memref<1x32x128xf32, #tpu.memory_space<vmem>>) attributes {dimension_semantics = [#tpu.dimension_semantics<parallel>, #tpu.dimension_semantics<parallel>], iteration_bounds = array<i64: 2, 2>, scalar_prefetch = 0 : i64, scratch_operands = 0 : i64, tpu.core_type = #tpu.core_type<tc>, window_params = [{transform_indices = @transform_0, window_bounds = array<i64: 1, 32, 128>}, {transform_indices = @transform_1, window_bounds = array<i64: 1, 32, 128>}, {pipeline_mode = #tpu.pipeline_mode<synchronous>, transform_indices = @transform_2, window_bounds = array<i64: 64, 32>}, {pipeline_mode = #tpu.pipeline_mode<synchronous>, transform_indices = @transform_3, window_bounds = array<i64: 64, 1>}, {pipeline_mode = #tpu.pipeline_mode<synchronous>, transform_indices = @transform_4, window_bounds = array<i64: 32, 32>}, {pipeline_mode = #tpu.pipeline_mode<synchronous>, transform_indices = @transform_5, window_bounds = array<i64: 32, 1>}, {pipeline_mode = #tpu.pipeline_mode<synchronous>, transform_indices = @transform_6, window_bounds = array<i64: 32, 32>}, {pipeline_mode = #tpu.pipeline_mode<synchronous>, transform_indices = @transform_7, window_bounds = array<i64: 32, 1>}, {transform_indices = @transform_8, window_bounds = array<i64: 1, 32, 128>}]} {
    %c0 = arith.constant 0 : index
    %c0_0 = arith.constant 0 : index
    %c0_1 = arith.constant 0 : index
    %0 = vector.load %arg3[%c0, %c0_0, %c0_1] : memref<1x32x128xf32, #tpu.memory_space<vmem>>, vector<1x32x128xf32>
    %1 = vector.shape_cast %0 : vector<1x32x128xf32> to vector<32x128xf32>
    %c0_2 = arith.constant 0 : index
    %c0_3 = arith.constant 0 : index
    %2 = vector.load %arg4[%c0_2, %c0_3] : memref<64x32xf32, #tpu.memory_space<vmem>>, vector<64x32xf32>
    %cst = arith.constant dense<0.000000e+00> : vector<64x128xf32>
    %3 = tpu.matmul %2, %1, %cst {dimension_numbers = #tpu.dot_dimension_numbers<[1], [0], [0], [1], [0, 0, 1, 1], [], []>} : vector<64x32xf32>, vector<32x128xf32>, vector<64x128xf32> -> vector<64x128xf32>
    %c0_4 = arith.constant 0 : index
    %c0_5 = arith.constant 0 : index
    %4 = vector.load %arg5[%c0_4, %c0_5] : memref<64x1xf32, #tpu.memory_space<vmem>>, vector<64x1xf32>
    %5 = vector.broadcast %4 : vector<64x1xf32> to vector<64x128xf32>
    %6 = arith.addf %3, %5 : vector<64x128xf32>
    %cst_6 = arith.constant 1.000000e-01 : f32
    %7 = vector.broadcast %cst_6 : f32 to vector<64x128xf32>
    %8 = arith.mulf %7, %6 : vector<64x128xf32>
    %9 = arith.maximumf %6, %8 : vector<64x128xf32>
    %c0_7 = arith.constant 0 : index
    %c0_8 = arith.constant 0 : index
    %10 = vector.load %arg6[%c0_7, %c0_8] : memref<32x32xf32, #tpu.memory_space<vmem>>, vector<32x32xf32>
    %11 = vector.extract_strided_slice %9 {offsets = [0, 0], sizes = [32, 128], strides = [1, 1]} : vector<64x128xf32> to vector<32x128xf32>
    %cst_9 = arith.constant dense<0.000000e+00> : vector<32x128xf32>
    %12 = tpu.matmul %10, %11, %cst_9 {dimension_numbers = #tpu.dot_dimension_numbers<[1], [0], [0], [1], [0, 0, 1, 1], [], []>} : vector<32x32xf32>, vector<32x128xf32>, vector<32x128xf32> -> vector<32x128xf32>
    %c0_10 = arith.constant 0 : index
    %c0_11 = arith.constant 0 : index
    %13 = vector.load %arg7[%c0_10, %c0_11] : memref<32x1xf32, #tpu.memory_space<vmem>>, vector<32x1xf32>
    %14 = vector.broadcast %13 : vector<32x1xf32> to vector<32x128xf32>
    %15 = arith.addf %12, %14 : vector<32x128xf32>
    %c0_12 = arith.constant 0 : index
    %c0_13 = arith.constant 0 : index
    %16 = vector.load %arg8[%c0_12, %c0_13] : memref<32x32xf32, #tpu.memory_space<vmem>>, vector<32x32xf32>
    %17 = vector.extract_strided_slice %9 {offsets = [32, 0], sizes = [32, 128], strides = [1, 1]} : vector<64x128xf32> to vector<32x128xf32>
    %cst_14 = arith.constant dense<0.000000e+00> : vector<32x128xf32>
    %18 = tpu.matmul %16, %17, %cst_14 {dimension_numbers = #tpu.dot_dimension_numbers<[1], [0], [0], [1], [0, 0, 1, 1], [], []>} : vector<32x32xf32>, vector<32x128xf32>, vector<32x128xf32> -> vector<32x128xf32>
    %c0_15 = arith.constant 0 : index
    %c0_16 = arith.constant 0 : index
    %19 = vector.load %arg9[%c0_15, %c0_16] : memref<32x1xf32, #tpu.memory_space<vmem>>, vector<32x1xf32>
    %20 = vector.broadcast %19 : vector<32x1xf32> to vector<32x128xf32>
    %21 = arith.addf %18, %20 : vector<32x128xf32>
    %c0_17 = arith.constant 0 : index
    %c0_18 = arith.constant 0 : index
    %c0_19 = arith.constant 0 : index
    %22 = vector.load %arg2[%c0_17, %c0_18, %c0_19] : memref<1x32x128xf32, #tpu.memory_space<vmem>>, vector<1x32x128xf32>
    %23 = vector.shape_cast %22 : vector<1x32x128xf32> to vector<32x128xf32>
    %24 = arith.mulf %23, %15 : vector<32x128xf32>
    %25 = arith.addf %24, %21 : vector<32x128xf32>
    %c0_20 = arith.constant 0 : index
    %c0_21 = arith.constant 0 : index
    %c0_22 = arith.constant 0 : index
    %26 = vector.load %arg10[%c0_20, %c0_21, %c0_22] : memref<1x32x128xf32, #tpu.memory_space<vmem>>, vector<1x32x128xf32>
    %27 = vector.shape_cast %26 : vector<1x32x128xf32> to vector<32x128xf32>
    %28 = vector.shape_cast %25 : vector<32x128xf32> to vector<1x32x128xf32>
    tpu.vector_store %arg10[%c0_20, %c0_21, %c0_22], %28 {strides = array<i32>} : memref<1x32x128xf32, #tpu.memory_space<vmem>>, vector<1x32x128xf32>,
    return
  }
  func.func @transform_0(%arg0: i32, %arg1: i32) -> (i32, i32, i32) {
    %c0_i32 = arith.constant 0 : i32
    %c0_i32_0 = arith.constant 0 : i32
    return %arg0, %c0_i32, %arg1 : i32, i32, i32
  }
  func.func @transform_1(%arg0: i32, %arg1: i32) -> (i32, i32, i32) {
    %c0_i32 = arith.constant 0 : i32
    %c0_i32_0 = arith.constant 0 : i32
    return %arg0, %c0_i32, %arg1 : i32, i32, i32
  }
  func.func @transform_2(%arg0: i32, %arg1: i32) -> (i32, i32) {
    %c0_i32 = arith.constant 0 : i32
    %c0_i32_0 = arith.constant 0 : i32
    %c0_i32_1 = arith.constant 0 : i32
    return %c0_i32, %c0_i32_0 : i32, i32
  }
  func.func @transform_3(%arg0: i32, %arg1: i32) -> (i32, i32) {
    %c0_i32 = arith.constant 0 : i32
    %c0_i32_0 = arith.constant 0 : i32
    %c0_i32_1 = arith.constant 0 : i32
    return %c0_i32, %c0_i32_0 : i32, i32
  }
  func.func @transform_4(%arg0: i32, %arg1: i32) -> (i32, i32) {
    %c0_i32 = arith.constant 0 : i32
    %c0_i32_0 = arith.constant 0 : i32
    %c0_i32_1 = arith.constant 0 : i32
    return %c0_i32, %c0_i32_0 : i32, i32
  }
  func.func @transform_5(%arg0: i32, %arg1: i32) -> (i32, i32) {
    %c0_i32 = arith.constant 0 : i32
    %c0_i32_0 = arith.constant 0 : i32
    %c0_i32_1 = arith.constant 0 : i32
    return %c0_i32, %c0_i32_0 : i32, i32
  }
  func.func @transform_6(%arg0: i32, %arg1: i32) -> (i32, i32) {
    %c0_i32 = arith.constant 0 : i32
    %c0_i32_0 = arith.constant 0 : i32
    %c0_i32_1 = arith.constant 0 : i32
    return %c0_i32, %c0_i32_0 : i32, i32
  }
  func.func @transform_7(%arg0: i32, %arg1: i32) -> (i32, i32) {
    %c0_i32 = arith.constant 0 : i32
    %c0_i32_0 = arith.constant 0 : i32
    %c0_i32_1 = arith.constant 0 : i32
    return %c0_i32, %c0_i32_0 : i32, i32
  }
  func.func @transform_8(%arg0: i32, %arg1: i32) -> (i32, i32, i32) {
    %c0_i32 = arith.constant 0 : i32
    %c0_i32_0 = arith.constant 0 : i32
    return %arg0, %c0_i32, %arg1 : i32, i32, i32
  }
}

</mosaic_0001>

<bundles_post_ra>
// kernel: tpu_custom_call.1
= control target key start
LH: loop header
LB: loop body
LE: loop exit
PB: predicated region body
PF: predicated region fallthrough
CT: control target
= control target key end

     0   :  { %s1721_s0 = inlined_call_operand.vmem [shape: f32[2,32,256], index: 0, kind: input, shape index: {}]   ;;  %s1722_s1 = inlined_call_operand.hbm [shape: f32[2,32,256], index: 1, kind: input, shape index: {}]   ;;  %s1723_s2 = inlined_call_operand.vmem [shape: f32[64,32], index: 2, kind: input, shape index: {}]   ;;  %s1724_s3 = inlined_call_operand.vmem [shape: f32[64,1], index: 3, kind: input, shape index: {}]   ;;  %s1725_s4 = inlined_call_operand.vmem [shape: f32[32,32], index: 4, kind: input, shape index: {}]   ;;  %s1726_s5 = inlined_call_operand.vmem [shape: f32[32,1], index: 5, kind: input, shape index: {}]   ;;  %s1727_s6 = inlined_call_operand.vmem [shape: f32[32,32], index: 6, kind: input, shape index: {}]   ;;  %s1728_s7 = inlined_call_operand.vmem [shape: f32[32,1], index: 7, kind: input, shape index: {}]   ;;  %s1729_s8 = inlined_call_operand.hbm [shape: f32[2,32,256], index: 8, kind: output, shape index: {}]  }
   0x1   :  { %1734 = sst [smem:[#allocation13_spill]] %s1721_s0 }
   0x2   :  { %13 = vsyncpa [#allocation4], 0 }
   0x3   :  { %15 = vsyncpa [#allocation4 + $0x1], 0 }
   0x4   :  { %16 = vsyncpa [#allocation5], 0 }
   0x5   :  { %18 = vsyncpa [#allocation5 + $0x1], 0  ;;  %s1405_s27 = smov 0   ;;  %s1407_s28 = smov 0  }
   0x6   :  { %s1409_s29 = smov 0   ;;  %s1411_s30 = smov 0  }
   0x7   :  { %s1413_s9 = smov 0   ;;  %s1415_s10 = smov 0  }
   0x8   :  { %s1417_s11 = smov 0   ;;  %s1419_s12 = smov 0  }
   0x9 LB: > { %s1006_s13 = sadd.s32 4294967295, %s1349_s12   ;;  %s1007_s14 = sadd.s32 4294967294, %s1349_s12   ;;  %s1349_s12 = sphi %s1419_s12, %s24_s12   ;;  %s1345_s11 = sphi %s1417_s11, %s1756_s11   ;;  %s1341_s10 = sphi %s1415_s10, %s1755_s10   ;;  %s1337_s9 = sphi %s1413_s9, %s1754_s9   ;;  %s1333_s30 = sphi %s1411_s30, %s1753_s30   ;;  %s1329_s29 = sphi %s1409_s29, %s1752_s29   ;;  %s1325_s28 = sphi %s1407_s28, %s1751_s28   ;;  %s1321_s27 = sphi %s1405_s27, %s1750_s27  }
   0xa   : > { %s33_s15 = sadd.s32 1, %s1341_s10  ;;  %s36_s16 = sadd.s32 1, %s1345_s11 }
   0xb   : > { %p34_p0 = scmp.ge.s32.totalorder %s33_s15, 2  ;;  %p52_p1 = scmp.ne.s32.totalorder %s1329_s29, %s1325_s28 }
   0xc   : > { %p53_p2 = scmp.eq.s32.totalorder %s1349_s12, 0  ;;  %p86_p5 = scmp.ne.s32.totalorder %s1325_s28, %s1321_s27 }
   0xd   : > { %s1758_s15 = smov (%p34_p0, %s33_s15), 0  ;;  %s1760_s16 = smov (!%p34_p0, %s36_s16), %s1345_s11 }
   0xe   : > { %1735 = sst [smem:[#allocation9_spill]] %s1758_s15  ;;  %s41_s17 = ssub.s32 %s1341_s10, %s1758_s15 }
   0xf   : > { %p1457_p3 = por %p53_p2, %p52_p1  ;;  %p38_p4 = scmp.ge.s32.totalorder %s1760_s16, 2 }
  0x10   : > { %p87_p6 = scmp.eq.s32.totalorder %s1006_s13, 0  ;;  %p238_p7 = scmp.eq.s32.totalorder %s1006_s13, 3 }
  0x11   : > { %s1762_s16 = smov (%p38_p4, %s1760_s16), 0  ;;  %p244_p10 = scmp.eq.s32.totalorder %s1007_s14, 3 }
  0x12   : > { %1737 = sst [smem:[#allocation10_spill]] %s1762_s16  ;;  %p1465_p8 = por %p87_p6, %p86_p5 }
  0x13   : > { %p1469_p9 = por %p238_p7, %p52_p1  ;;  %s40_s21 = ssub.s32 %s1345_s11, %s1762_s16 }
  0x14   : > { %s42_s22 = sor.u32 %s41_s17, %s40_s21  ;;  %s45_s23 = sadd.s32 1, %s1329_s29 }
  0x15   : > { %s1739_s20 = scalar_select %p1469_p9, 1, 0 }
  0x16   : > { %p43_p11 = scmp.eq.s32.totalorder %s42_s22, 0  ;;  %p1476_p12 = por %p244_p10, %p86_p5 }
  0x17   : > { %p1009_p13 = scmp.ge.s32.totalorder %s1349_s12, 4 }
  0x18   : > { %s1740_s24 = scalar_select %p1476_p12, 1, 0 }
  0x19   : > { %s1481_s25 = scalar_select %p43_p11, %s1329_s29, %s45_s23  }
  0x1a   : > { %1741 = sst [smem:[#allocation11_spill]] %s1740_s24  ;;  %278 = sbr.rel (%p1009_p13) target bundleno = 73 (0x49), region = 40 }
  0x1b   : > { %1742 = sst [smem:[#allocation12_spill]] %s1481_s25 }
  0x21   : > { %281 = sbr.rel (!%p1457_p3) target bundleno = 45 (0x2d), region = 44  ;;  %s283_s26 = sand.u32 (%p1457_p3), 1, %s1329_s29  }
  0x22   : > { %s1011_s13 = sshll.u32 (%p1457_p3), %s1345_s11, 3  ;;  %s1010_s14 = sshll.u32 (%p1457_p3), %s283_s26, 5 }
  0x23   : > { %s287_s17 = sadd.s32 (%p1457_p3), %s1341_s10, %s1011_s13  ;;  %s1743_s0 = sld [smem:[#allocation13_spill]] (%p1457_p3) }
  0x24   : > { %s1012_s21 = sshll.u32 (%p1457_p3), %s287_s17, 3  ;;  %s285_s23 = scalar_lea.vmem (%p1457_p3), [#allocation2], %s1010_s14 }
  0x29   : > { %s289_s15 = scalar_lea.vmem %s1743_s0, %s1012_s21 }
  0x2a   : > { %v323_v0 = vld [vmem:[%s289_s15] sm:$0xff]  ;;  %v325_v1 = vld [vmem:[%s289_s15 + $0x10] sm:$0xff] }
  0x2b   : > { %v327_v2 = vld [vmem:[%s289_s15 + $0x20] sm:$0xff]  ;;  %324 = vst [vmem:[%s285_s23] sm:$0xff] %v323_v0  ;;  %326 = vst [vmem:[%s285_s23 + $0x8] sm:$0xff] %v325_v1  ;;  %v329_v3 = vld [vmem:[%s289_s15 + $0x30] sm:$0xff] }
  0x2c   : > { %328 = vst [vmem:[%s285_s23 + $0x10] sm:$0xff] %v327_v2  ;;  %330 = vst [vmem:[%s285_s23 + $0x18] sm:$0xff] %v329_v3 }
  0x2d PF: > { %s337_s26 = sand.u32 1, %s1329_s29   ;;  %s1014_s13 = sshll.u32 %s1345_s11, 3 }
  0x2e   : > { %s1013_s17 = sshll.u32 %s337_s26, 5  ;;  %s346_s25 = sadd.s32 %s1341_s10, %s1014_s13 }
  0x2f   : > { %s1015_s16 = sshll.u32 %s346_s25, 7  ;;  %s341_s21 = scalar_lea.vmem [#allocation3], %s1013_s17 }
  0x30   : > { %s349_s22 = sshll.u32 %s341_s21, 4  ;;  %s1498_s14 = scalar_lea.hbm %s1722_s1, %s1015_s16  ;;  %s1500_s22 = int_to_ptr.vmem [resolvable:$true] %s349_s22 }
  0x31   : > { %s1502_s15 = scalar_lea.sflag [#allocation4], %s337_s26  ;;  %s1223_s23 = scalar_lea.hbm %s1498_s14, 512 }
  0x32   : > { %p1224_p0 = scmp.ne.s32.totalorder %s1498_s14, %s1223_s23  ;;  %s1227_s17 = scalar_lea.hbm %s1722_s1, 2048 }
  0x33   : > { %p1228_p4 = scmp.lt.u32.totalorder %s1498_s14, %s1722_s1  ;;  %p1229_p5 = scmp.lt.u32.totalorder %s1227_s17, %s1223_s23 }
  0x34   : > { %p1225_p1 = pnand %p1224_p0, %p1457_p3  ;;  %p1231_p7 = scmp.lt.u32.totalorder %s1223_s23, %s1498_s14 }
  0x35   : > { %p1230_p6 = por %p1229_p5, %p1228_p4 }
  0x36   : > { %p1226_p2 = pneg %p1225_p1 }
  0x37   : > { %p1232_p10 = por %p1231_p7, %p1230_p6 }
  0x39   : > { %p1233_p11 = pnand %p1232_p10, %p1226_p2 }
  0x3b   : > { %1236 = shalt.err (!%p1233_p11)
}
  0x3c   : > { %s1237_s26 = scalar_lea.vmem %s1500_s22, 512  ;;  %s1351_s16 = smov [#allocation3]  }
  0x3d   : > { %p1238_p13 = scmp.ne.s32.totalorder %s1500_s22, %s1237_s26  ;;  %s1241_s21 = sshll.u32 %s1351_s16, 4  ;;  %s1242_s21 = int_to_ptr.vmem [resolvable:$false] %s1241_s21 }
  0x3e   : > { %s1243_s25 = scalar_lea.vmem %s1242_s21, 1024  ;;  %p1244_p12 = scmp.lt.s32.totalorder %s1500_s22, %s1242_s21 }
  0x3f   : > { %p1239_p0 = pnand %p1238_p13, %p1457_p3  ;;  %p1245_p9 = scmp.lt.s32.totalorder %s1243_s25, %s1237_s26 }
  0x41   : > { %p1240_p1 = pneg %p1239_p0  ;;  %p1246_p4 = por %p1245_p9, %p1244_p12 }
  0x43   : > { %p1247_p5 = pnand %p1246_p4, %p1240_p1 }
  0x45   : > { %1250 = shalt.err (!%p1247_p5)
}
  0x46   : > { %s1352_s23 = smov 256   ;;  %s1353_s13 = smov 128  }
  0x47   : > { %s1354_s17 = smov 8  }
  0x48   : > { %1141 = dma.hbm_to_vmem [thread:$0]  (%p1457_p3), %s1498_s14, 512, %s1500_s22, %s1502_s15, %s1352_s23, %s1353_s13, %s1354_s17  }
  0x49 PF: > { %p1016_p2 = scmp.ge.s32.totalorder %s1349_s12, 1  ;;  %p357_p6 = scmp.lt.s32.totalorder %s1349_s12, 5 }
  0x4b   : > { %p358_p7 = pnand %p1016_p2, %p357_p6 }
  0x4c   : > { %s1529_s0 = sand.u32 (!%p358_p7), 1, %s1325_s28  }
  0x4d   : > { %361 = sbr.rel (%p358_p7) target bundleno = 570 (0x23a), region = 86  ;;  %s1532_s24 = sshll.u32 (!%p358_p7), %s1529_s0, 5 }
  0x4e   : > { %s1535_s26 = scalar_lea.vmem (!%p358_p7), [#allocation2], %s1532_s24  ;;  %s371_s18 = scalar_lea.sflag (!%p358_p7), [#allocation4], %s1529_s0 }
  0x4f   : > { %s374_s22 = scalar_lea.vmem (!%p358_p7), [#allocation3], %s1532_s24 }
  0x54   : > { %1312 = dma.done.wait (%p1465_p8), %s371_s18, 512  }
  0x55   : > { %1314 = vsyncadd (%p1465_p8), %s371_s18, 4294966784  ;;  %v1355_v4 = vmov 0   ;;  %vm471_vm0 = vcmask 261120   ;;  %v411_v5 = vld [vmem:[%s374_s22] sm:$0xff]  ;;  %v412_v6 = vld [vmem:[%s374_s22 + $0x8] sm:$0xff]  ;;  %s1037_s18 = sshll.u32 %s1337_s9, 3 }
  0x56   : > { %1221 = vset.pattern.permute.xlu0 %v1355_v4  ;;  %1222 = vset.pattern.permute.xlu1 %v1355_v4  ;;  %v413_v7 = vld [vmem:[%s374_s22 + $0x10] sm:$0xff]  ;;  %v1117_v8 = vpack.c.bf16 %v412_v6, %v411_v5  ;;  %v414_v9 = vld [vmem:[%s374_s22 + $0x18] sm:$0xff]  ;;  %v415_v10 = vld [vmem:[%s1723_s2] sm:$0xff]  ;;  %s895_s22 = sadd.s32 %s1333_s30, %s1037_s18  ;;  %s410_s14 = scalar_lea.vmem [#allocation6], %s1532_s24 }
  0x57   : > { %v1121_v11 = vpack.c.bf16 %v414_v9, %v413_v7  ;;  %1077 = vmatprep.mubr.msk.f32.mxu0 %vm471_vm0, %v415_v10  ;;  %v423_v12 = vld [vmem:[%s1724_s3] sm:$0xff]  ;;  %v425_v13 = vld [vmem:[%s1724_s3 + $0x10] sm:$0xff]  ;;  %v424_v14 = vld [vmem:[%s1724_s3 + $0x8] sm:$0xff]  ;;  %s898_s15 = sshll.u32 %s410_s14, 4  ;;  %s1038_s9 = sshll.u32 %s895_s22, 7  ;;  %s1662_s15 = int_to_ptr.vmem [resolvable:$true] %s898_s15 }
  0x58   : > { %1118 = vmatprep.subr.bf16.mxu0 %v1117_v8  ;;  %433 = vperm.xlu0 %1221, %v423_v12   ;;  %v426_v15 = vld [vmem:[%s1724_s3 + $0x18] sm:$0xff]  ;;  %v416_v16 = vld [vmem:[%s1723_s2 + $0x8] sm:$0xff]  ;;  %v417_v17 = vld [vmem:[%s1723_s2 + $0x10] sm:$0xff]  ;;  %s884_s19 = scalar_lea.sflag [#allocation5], %s1529_s0  ;;  %s1251_s16 = scalar_lea.vmem %s1662_s15, 512 }
  0x59   : > { %1120 = vmatpush3.bf16.msra.mxu0 %v1117_v8  ;;  %443 = vperm.xlu1 %1222, %v425_v13   ;;  %v427_v18 = vld [vmem:[%s1724_s3 + $0x20] sm:$0xff]  ;;  %v428_v19 = vld [vmem:[%s1724_s3 + $0x28] sm:$0xff]  ;;  %v418_v20 = vld [vmem:[%s1723_s2 + $0x18] sm:$0xff]  ;;  %p1252_p3 = scmp.ne.s32.totalorder %s1662_s15, %s1251_s16  ;;  %p1744_p8 = scmp.ne.s32.totalorder %s1739_s20, 0 }
  0x5a   : > { %1122 = vmatprep.subr.bf16.mxu0 %v1121_v11  ;;  %v419_v21 = vld [vmem:[%s1723_s2 + $0x20] sm:$0xff]  ;;  %v429_v22 = vld [vmem:[%s1724_s3 + $0x30] sm:$0xff]  ;;  %v430_v23 = vld [vmem:[%s1724_s3 + $0x38] sm:$0xff]  ;;  %s1356_s21 = smov [#allocation6]  }
  0x5b   : > { %v420_v24 = vld [vmem:[%s1723_s2 + $0x28] sm:$0xff]  ;;  %v421_v25 = vld [vmem:[%s1723_s2 + $0x30] sm:$0xff]  ;;  %v621_v26 = vld [vmem:[%s1726_s5] sm:$0xff]  ;;  %p1253_p9 = pnand %p1252_p3, %p1744_p8  ;;  %s1255_s25 = sshll.u32 %s1356_s21, 4  ;;  %s1256_s25 = int_to_ptr.vmem [resolvable:$false] %s1255_s25 }
  0x5c   : > { %438 = vperm.xlu0 %1221, %v424_v14   ;;  %v622_v27 = vld [vmem:[%s1726_s5 + $0x8] sm:$0xff]  ;;  %v422_v28 = vld [vmem:[%s1723_s2 + $0x38] sm:$0xff]  ;;  %v623_v29 = vld [vmem:[%s1726_s5 + $0x10] sm:$0xff]  ;;  %s1257_s23 = scalar_lea.vmem %s1256_s25, 1024  ;;  %p1258_p10 = scmp.lt.s32.totalorder %s1662_s15, %s1256_s25 }
  0x5d   : > { %1124 = vmatpush3.bf16.msra.mxu0 %v1121_v11  ;;  %448 = vperm.xlu1 %1222, %v426_v15   ;;  %v624_v30 = vld [vmem:[%s1726_s5 + $0x18] sm:$0xff]  ;;  %v746_v31 = vld [vmem:[%s1728_s7] sm:$0xff]  ;;  %v747_v32 = vld [vmem:[%s1728_s7 + $0x8] sm:$0xff]  ;;  %p1254_p12 = pneg %p1253_p9  ;;  %p1259_p11 = scmp.lt.s32.totalorder %s1257_s23, %s1251_s16 }
  0x5e   : > { %v748_v33 = vld [vmem:[%s1728_s7 + $0x10] sm:$0xff]  ;;  %v749_v34 = vld [vmem:[%s1728_s7 + $0x18] sm:$0xff]  ;;  %v617_v35 = vld [vmem:[%s1725_s4] sm:$0xff] }
  0x5f   : > { %1097 = vmatprep.mubr.msk.f32.mxu1 %vm471_vm0, %v617_v35  ;;  %v618_v11 = vld [vmem:[%s1725_s4 + $0x8] sm:$0xff]  ;;  %v619_v14 = vld [vmem:[%s1725_s4 + $0x10] sm:$0xff]  ;;  %p1260_p13 = por %p1259_p11, %p1258_p10 }
  0x60   : > { %1078 = vmatmul.mubr.msk.f32.vlgmr.msra.gmra.mrb[0].mxu0 %vm471_vm0, %v416_v16  ;;  %453 = vperm.xlu0 %1221, %v427_v18  }
  0x61   : > { %1080 = vmatprep.mubr.msk.f32.mxu0 %vm471_vm0, %v417_v17  ;;  %458 = vperm.xlu1 %1222, %v428_v19   ;;  %v620_v17 = vld [vmem:[%s1725_s4 + $0x18] sm:$0xff]  ;;  %v742_v19 = vld [vmem:[%s1727_s6] sm:$0xff]  ;;  %p1261_p0 = pnand %p1260_p13, %p1254_p12 }
  0x64   : > { %1081 = vmatmul.mubr.msk.f32.gmra.mrb[2].mxu0 %vm471_vm0, %v418_v20  ;;  %463 = vperm.xlu0 %1221, %v429_v22   ;;  %v743_v20 = vld [vmem:[%s1727_s6 + $0x8] sm:$0xff]  ;;  %v745_v22 = vld [vmem:[%s1727_s6 + $0x18] sm:$0xff] }
  0x65   : > { %1083 = vmatprep.mubr.msk.f32.mxu0 %vm471_vm0, %v419_v21  ;;  %468 = vperm.xlu1 %1222, %v430_v23   ;;  %v744_v21 = vld [vmem:[%s1727_s6 + $0x10] sm:$0xff] }
  0x68   : > { %1084 = vmatmul.mubr.msk.f32.gmra.mrb[4].mxu0 %vm471_vm0, %v420_v24  ;;  %627 = vperm.xlu0 %1221, %v621_v26  }
  0x69   : > { %1086 = vmatprep.mubr.msk.f32.mxu0 %vm471_vm0, %v421_v25  ;;  %632 = vperm.xlu1 %1222, %v622_v27  }
  0x6c   : > { %1087 = vmatmul.mubr.msk.f32.gmra.mrb[6].mxu0 %vm471_vm0, %v422_v28  ;;  %637 = vperm.xlu0 %1221, %v623_v29  }
  0x6d   : > { %642 = vperm.xlu1 %1222, %v624_v30  }
  0x70   : > { %752 = vperm.xlu0 %1221, %v746_v31  }
  0x71   : > { %757 = vperm.xlu1 %1222, %v747_v32  }
  0x74   : > { %762 = vperm.xlu0 %1221, %v748_v33   ;;  %v868_v33 = vld [vmem:[%s1535_s26 + $0x8] sm:$0xff] }
  0x75   : > { %767 = vperm.xlu1 %1222, %v749_v34  }
  0xd7   : > { %v434_v36 = vpop.permute.xlu0 %433 }
  0xd8   : > { %v444_v37 = vpop.permute.xlu1 %443 }
  0xdb   : > { %v439_v38 = vpop.permute.xlu0 %438 }
  0xdc   : > { %v449_v39 = vpop.permute.xlu1 %448 }
  0xdf   : > { %v454_v53 = vpop.permute.xlu0 %453 }
  0xe0   : > { %v459_v50 = vpop.permute.xlu1 %458 }
  0xe3   : > { %v464_v4 = vpop.permute.xlu0 %463 }
  0xe4   : > { %v469_v0 = vpop.permute.xlu1 %468 }
  0xe7   : > { %v628_v24 = vpop.permute.xlu0 %627 }
  0xe8   : > { %v633_v23 = vpop.permute.xlu1 %632 }
  0xeb   : > { %v638_v27 = vpop.permute.xlu0 %637 }
  0xec   : > { %v643_v25 = vpop.permute.xlu1 %642 }
  0xef   : > { %v753_v35 = vpop.permute.xlu0 %752 }
  0xf0   : > { %v758_v32 = vpop.permute.xlu1 %757 }
 0x133   : > { %v1079_v40 = vpop.f32.mrb[0].mxu0 }
 0x134   : > { %v568_v41 = vadd.f32 %v1079_v40, %v439_v38  ;;  %v562_v42 = vpop.f32.mrb[1].mxu0 }
 0x135   : > { %v563_v43 = vadd.f32 %v562_v42, %v434_v36  ;;  %v867_v36 = vld [vmem:[%s1535_s26] sm:$0xff] }
 0x136   : > { %v602_v44 = vmul.f32 0.1, %v568_v41 }
 0x137   : > { %v601_v45 = vmul.f32 0.1, %v563_v43  ;;  %v1082_v46 = vpop.f32.mrb[2].mxu0 }
 0x138   : > { %v610_v47 = vmax.f32 %v568_v41, %v602_v44  ;;  %v578_v48 = vadd.f32 %v1082_v46, %v449_v39  ;;  %v572_v49 = vpop.f32.mrb[3].mxu0  ;;  %v869_v46 = vld [vmem:[%s1535_s26 + $0x10] sm:$0xff] }
 0x139   : > { %v609_v51 = vmax.f32 %v563_v43, %v601_v45  ;;  %v573_v52 = vadd.f32 %v572_v49, %v444_v37  ;;  %v870_v43 = vld [vmem:[%s1535_s26 + $0x18] sm:$0xff]  ;;  %s1667_s26 = scalar_lea.hbm %s1729_s8, %s1038_s9 }
 0x13a   : > { %v604_v54 = vmul.f32 0.1, %v578_v48 }
 0x13b   : > { %v603_v55 = vmul.f32 0.1, %v573_v52  ;;  %v1085_v56 = vpop.f32.mrb[4].mxu0  ;;  %v1125_v57 = vpack.c.bf16 %v610_v47, %v609_v51  ;;  %v763_v51 = vpop.permute.xlu0 %762 }
 0x13c   : > { %v612_v58 = vmax.f32 %v578_v48, %v604_v54  ;;  %v588_v59 = vadd.f32 %v1085_v56, %v459_v50  ;;  %v582_v60 = vpop.f32.mrb[5].mxu0  ;;  %v768_v48 = vpop.permute.xlu1 %767 }
 0x13d   : > { %v611_v61 = vmax.f32 %v573_v52, %v603_v55  ;;  %v583_v62 = vadd.f32 %v582_v60, %v454_v53  ;;  %1126 = vmatprep.subr.bf16.mxu1 %v1125_v57 }
 0x13e   : > { %v606_v63 = vmul.f32 0.1, %v588_v59  ;;  %1128 = vmatpush3.bf16.msra.mxu1 %v1125_v57 }
 0x13f   : > { %v605_v1 = vmul.f32 0.1, %v583_v62  ;;  %v1088_v2 = vpop.f32.mrb[6].mxu0  ;;  %v1129_v3 = vpack.c.bf16 %v612_v58, %v611_v61 }
 0x140   : > { %v614_v5 = vmax.f32 %v588_v59, %v606_v63  ;;  %v598_v6 = vadd.f32 %v1088_v2, %v469_v0  ;;  %v592_v7 = vpop.f32.mrb[7].mxu0 }
 0x141   : > { %v613_v8 = vmax.f32 %v583_v62, %v605_v1  ;;  %v593_v9 = vadd.f32 %v592_v7, %v464_v4  ;;  %1130 = vmatprep.subr.bf16.mxu1 %v1129_v3 }
 0x142   : > { %v608_v10 = vmul.f32 0.1, %v598_v6  ;;  %1132 = vmatpush3.bf16.msra.mxu1 %v1129_v3 }
 0x143   : > { %v607_v12 = vmul.f32 0.1, %v593_v9  ;;  %v1133_v13 = vpack.c.bf16 %v614_v5, %v613_v8 }
 0x144   : > { %v616_v15 = vmax.f32 %v598_v6, %v608_v10 }
 0x145   : > { %v615_v16 = vmax.f32 %v593_v9, %v607_v12  ;;  %1098 = vmatmul.mubr.msk.f32.vlgmr.msra.gmra.mrb[0].mxu1 %vm471_vm0, %v618_v11  ;;  %1134 = vmatprep.subr.bf16.mxu1 %v1133_v13 }
 0x146   : > { %1136 = vmatpush3.bf16.msra.mxu1 %v1133_v13  ;;  %1100 = vmatprep.mubr.msk.f32.mxu1 %vm471_vm0, %v619_v14 }
 0x147   : > { %v1137_v18 = vpack.c.bf16 %v616_v15, %v615_v16 }
 0x149   : > { %1101 = vmatmul.mubr.msk.f32.gmra.mrb[2].mxu1 %vm471_vm0, %v620_v17  ;;  %1138 = vmatprep.subr.bf16.mxu1 %v1137_v18 }
 0x14a   : > { %1140 = vmatpush3.bf16.msra.mxu1 %v1137_v18  ;;  %1111 = vmatprep.mubr.msk.f32.mxu1 %vm471_vm0, %v742_v19 }
 0x14d   : > { %1112 = vmatmul.mubr.msk.f32.vlgmr.msra.gmra.mrb[4].mxu1 %vm471_vm0, %v743_v20 }
 0x14e   : > { %1114 = vmatprep.mubr.msk.f32.mxu1 %vm471_vm0, %v744_v21 }
 0x151   : > { %1115 = vmatmul.mubr.msk.f32.gmra.mrb[6].mxu1 %vm471_vm0, %v745_v22 }
 0x218   : > { %v1099_v26 = vpop.f32.mrb[0].mxu1 }
 0x219   : > { %v723_v28 = vpop.f32.mrb[1].mxu1  ;;  %v729_v30 = vadd.f32 %v1099_v26, %v633_v23 }
 0x21a   : > { %v724_v34 = vadd.f32 %v723_v28, %v628_v24 }
 0x21b   : > { %v872_v38 = vmul.f32 %v868_v33, %v729_v30 }
 0x21c   : > { %v1102_v29 = vpop.f32.mrb[2].mxu1  ;;  %v871_v42 = vmul.f32 %v867_v36, %v724_v34 }
 0x21d   : > { %v733_v31 = vpop.f32.mrb[3].mxu1  ;;  %v739_v39 = vadd.f32 %v1102_v29, %v643_v25 }
 0x21e   : > { %v734_v44 = vadd.f32 %v733_v31, %v638_v27 }
 0x21f   : > { %v874_v52 = vmul.f32 %v870_v43, %v739_v39 }
 0x220   : > { %v1113_v37 = vpop.f32.mrb[4].mxu1  ;;  %v873_v55 = vmul.f32 %v869_v46, %v734_v44 }
 0x221   : > { %v854_v40 = vadd.f32 %v1113_v37, %v758_v32  ;;  %v848_v41 = vpop.f32.mrb[5].mxu1 }
 0x222   : > { %v849_v45 = vadd.f32 %v848_v41, %v753_v35 }
 0x223   : > { %v876_v47 = vadd.f32 %v872_v38, %v854_v40 }
 0x224   : > { %v875_v49 = vadd.f32 %v871_v42, %v849_v45  ;;  %v1116_v50 = vpop.f32.mrb[6].mxu1 }
 0x225   : > { %880 = vst [vmem:[%s410_s14 + $0x8] sm:$0xff] %v876_v47  ;;  %v864_v53 = vadd.f32 %v1116_v50, %v768_v48  ;;  %v858_v54 = vpop.f32.mrb[7].mxu1 }
 0x226   : > { %879 = vst [vmem:[%s410_s14] sm:$0xff] %v875_v49  ;;  %v859_v56 = vadd.f32 %v858_v54, %v763_v51 }
 0x227   : > { %v878_v57 = vadd.f32 %v874_v52, %v864_v53 }
 0x228   : > { %v877_v58 = vadd.f32 %v873_v55, %v859_v56 }
 0x229   : > { %882 = vst [vmem:[%s410_s14 + $0x18] sm:$0xff] %v878_v57 }
 0x22a   : > { %881 = vst [vmem:[%s410_s14 + $0x10] sm:$0xff] %v877_v58 }
 0x22b   : > { %1264 = shalt.err (!%p1261_p0)
}
 0x22c   : > { %s1265_s13 = scalar_lea.hbm %s1667_s26, 512  ;;  %s1269_s22 = scalar_lea.hbm %s1729_s8, 2048 }
 0x22d   : > { %p1266_p1 = scmp.ne.s32.totalorder %s1667_s26, %s1265_s13  ;;  %p1270_p2 = scmp.lt.u32.totalorder %s1667_s26, %s1729_s8 }
 0x22e   : > { %p1271_p6 = scmp.lt.u32.totalorder %s1269_s22, %s1265_s13  ;;  %p1273_p3 = scmp.lt.u32.totalorder %s1265_s13, %s1667_s26 }
 0x22f   : > { %p1267_p4 = pnand %p1266_p1, %p1744_p8 }
 0x230   : > { %p1272_p7 = por %p1271_p6, %p1270_p2 }
 0x231   : > { %p1268_p5 = pneg %p1267_p4 }
 0x232   : > { %p1274_p9 = por %p1273_p3, %p1272_p7 }
 0x234   : > { %p1275_p12 = pnand %p1274_p9, %p1268_p5 }
 0x236   : > { %1278 = shalt.err (!%p1275_p12)
}
 0x237   : > { %s1357_s30 = smov 128   ;;  %s1358_s24 = smov 256  }
 0x238   : > { %s1359_s16 = smov 8  }
 0x239   : > { %1143 = dma.vmem_to_hbm [thread:$0]  (%p1744_p8), %s1662_s15, 512, %s1667_s26, %s884_s19, %s1357_s30, %s1358_s24, %s1359_s16  }
 0x23a PF: > { %s1745_s21 = sld [smem:[#allocation11_spill]]  ;;  %p1149_p10 = scmp.ge.s32.totalorder %s1349_s12, 2 }
 0x23b   : > { %s913_s25 = sand.u32 1, %s1321_s27  }
 0x23c   : > { %s914_s23 = scalar_lea.sflag [#allocation5], %s913_s25 }
 0x240   : > { %p1746_p11 = scmp.ne.s32.totalorder %s1745_s21, 0 }
 0x242   : > { %p1146_p13 = pnand %p1149_p10, %p1746_p11 }
 0x244   : > { %1316 = dma.done.wait (!%p1146_p13), %s914_s23, 512  }
 0x245   : > { %1318 = vsyncadd (!%p1146_p13), %s914_s23, 4294966784  ;;  %s24_s12 = sadd.s32 1, %s1349_s12   ;;  %s1747_s13 = sld [smem:[#allocation12_spill]] }
 0x246   : > { %p21_p0 = scmp.ge.s32.totalorder %s24_s12, 6   ;;  %s1748_s20 = sld [smem:[#allocation9_spill]] }
 0x247   : > { %s1749_s0 = sld [smem:[#allocation10_spill]]  ;;  %s1750_s27 = smov %s1325_s28 }
 0x248   : > { %s1751_s28 = smov %s1329_s29  ;;  %s1753_s30 = smov %s1341_s10 }
 0x249   : > { %s1754_s9 = smov %s1345_s11  ;;  %23 = sbr.rel (!%p21_p0) target bundleno = 9 (0x9), region = 143 }
 0x24b   : > { %s1752_s29 = smov %s1747_s13 }
 0x24c   : > { %s1755_s10 = smov %s1748_s20 }
 0x24d   : > { %s1756_s11 = smov %s1749_s0 }
 0x250   :  { %919 = vsyncpa [#allocation4], 1 }
 0x251   :  { %921 = vsyncpa [#allocation4 + $0x1], 1 }
 0x252   :  { %922 = vsyncpa [#allocation5], 1 }
 0x253   :  { %924 = vsyncpa [#allocation5 + $0x1], 1 }

</bundles_post_ra>
